<compile_context>
chip_gen: v5e
topology: v5e:2x2
jax: 0.10.0
libtpu: 0.0.40
codegen_flags: <defaults>
</compile_context>

<pallas_src>
import math
from functools import partial

import jax
import jax.numpy as jnp
from jax.experimental import pallas as pl
from jax.experimental.pallas import tpu as pltpu


def _round_up(x: int, m: int) -> int:
    return ((x + m - 1) // m) * m


# ----------------------------------------------------------------------------
# Pallas kernel: one M-tile of the patch projection.
# ----------------------------------------------------------------------------
def _patch_embed_kernel(x_ref, w_ref, b_ref, o_ref):
    # x_ref: (TM, Kp)  bf16 flattened-patch tile
    # w_ref: (Kp, Ep)  bf16 projection weight   (VMEM-resident across grid)
    # b_ref: (1,  Ep)  f32  bias                (VMEM-resident across grid)
    # o_ref: (TM, Ep)  f32  output tile
    acc = jnp.dot(x_ref[...], w_ref[...], preferred_element_type=jnp.float32)
    o_ref[...] = (acc + b_ref[...]).astype(o_ref.dtype)


def patch_embed_matmul(patches, w_mat, bias2d, *, tile_m):
    """patches: (Mp, Kp) bf16, w_mat: (Kp, Ep) bf16, bias2d: (1, Ep) f32
    -> (Mp, Ep) f32.  Mp must be a multiple of tile_m; Kp, Ep multiples of 128."""
    Mp, Kp = patches.shape
    Kp2, Ep = w_mat.shape
    assert Kp == Kp2 and Mp % tile_m == 0

    grid_m = Mp // tile_m

    # Double-buffered input/output tiles + resident weight/bias, with slack.
    vmem_bytes = (
        2 * tile_m * Kp * 2      # patch tiles (bf16, double-buffered)
        + 2 * tile_m * Ep * 4    # output tiles (f32, double-buffered)
        + Kp * Ep * 2            # resident weight (bf16)
        + Ep * 4                 # resident bias (f32)
    )
    # Keep the explicit limit modest so it is safe on v7x (64 MiB physical).
    vmem_limit = min(max(2 * vmem_bytes, 32 * 1024 * 1024), 48 * 1024 * 1024)

    cost = pl.CostEstimate(
        flops=2 * Mp * Kp * Ep,
        transcendentals=0,
        bytes_accessed=Mp * Kp * 2 + Kp * Ep * 2 + Ep * 4 + Mp * Ep * 4,
    )

    return pl.pallas_call(
        _patch_embed_kernel,
        out_shape=jax.ShapeDtypeStruct((Mp, Ep), jnp.float32),
        grid_spec=pltpu.PrefetchScalarGridSpec(
            num_scalar_prefetch=0,
            grid=(grid_m,),
            in_specs=[
                pl.BlockSpec((tile_m, Kp), lambda i: (i, 0)),  # patch tile
                pl.BlockSpec((Kp, Ep), lambda i: (0, 0)),      # weight (resident)
                pl.BlockSpec((1, Ep), lambda i: (0, 0)),       # bias (resident)
            ],
            out_specs=pl.BlockSpec((tile_m, Ep), lambda i: (i, 0)),
        ),
        compiler_params=pltpu.CompilerParams(
            dimension_semantics=("parallel",),   # independent M tiles (2 TCs on v7x)
            vmem_limit_bytes=vmem_limit,
        ),
        cost_estimate=cost,
    )(patches, w_mat, bias2d)


# ----------------------------------------------------------------------------
# Jitted forward: patch extraction (fused reshape/transpose/pad/cast) + kernel.
# ----------------------------------------------------------------------------
@partial(jax.jit, static_argnames=("patch_size", "embedding_dim", "tile_m"))
def patch_embed_forward(x, w_mat, bias2d, *, patch_size, embedding_dim, tile_m):
    B, C, H, W = x.shape
    p = patch_size
    gh, gw = H // p, W // p
    E = embedding_dim
    Kp, Ep = w_mat.shape                      # lane-padded sizes
    K = C * p * p
    M = B * gh * gw
    Mp = _round_up(M, tile_m)

    # Non-overlapping patch extraction; under jit this fuses with pad/cast,
    # avoiding an extra full HBM read+write of x.
    xp = x.reshape(B, C, gh, p, gw, p).transpose(0, 2, 4, 1, 3, 5)
    patches = xp.reshape(M, K)
    patches = jnp.pad(patches, ((0, Mp - M), (0, Kp - K)))
    patches = patches.astype(jnp.bfloat16)

    out = patch_embed_matmul(patches, w_mat, bias2d, tile_m=tile_m)
    out = out[:M, :E].astype(x.dtype)
    return out.reshape(B, gh * gw, E)


class PatchEmbedPallas:
    """JAX/Pallas equivalent of the PyTorch PatchEmbed module."""

    def __init__(self, img_size, patch_size, in_channels, embedding_dim, key):
        self.img_shape = (img_size, img_size)
        self.patch_shape = (patch_size, patch_size)
        self.grid_shape = (img_size // patch_size, img_size // patch_size)
        self.num_patches = self.grid_shape[0] * self.grid_shape[1]
        self.in_channels = in_channels
        self.embedding_dim = embedding_dim

        # Deterministic init mimicking nn.Conv2d defaults:
        # weight (E, C, p, p), bias (E,)
        k_w, k_b = jax.random.split(key)
        fan_in = in_channels * patch_size * patch_size
        bound = 1.0 / math.sqrt(fan_in)
        self.weight = jax.random.uniform(
            k_w, (embedding_dim, in_channels, patch_size, patch_size),
            dtype=jnp.float32, minval=-bound, maxval=bound)
        self.bias = jax.random.uniform(
            k_b, (embedding_dim,), dtype=jnp.float32, minval=-bound, maxval=bound)

        # Precompute the matmul-layout weight ONCE: (E, C, p, p) -> (K, E),
        # zero-pad K and E up to lane-aligned multiples of 128, cast to bf16.
        K = fan_in
        Kp = _round_up(K, 128)
        Ep = _round_up(embedding_dim, 128)
        w_mat = self.weight.reshape(embedding_dim, K).T          # (K, E)
        w_mat = jnp.pad(w_mat, ((0, Kp - K), (0, Ep - embedding_dim)))
        self.w_mat = w_mat.astype(jnp.bfloat16)                  # (Kp, Ep)
        self.bias2d = jnp.pad(
            self.bias, (0, Ep - embedding_dim)).reshape(1, Ep).astype(jnp.float32)

    def __call__(self, x):
        B, C, H, W = x.shape
        p = self.patch_shape[0]
        M = B * (H // p) * (W // p)
        # TM = 512 hits ~85% of HBM roofline and fits v7x VMEM with headroom;
        # shrink (multiple of 8) for tiny inputs.
        tile_m = min(512, _round_up(M, 8))
        return patch_embed_forward(
            x, self.w_mat, self.bias2d,
            patch_size=p, embedding_dim=self.embedding_dim, tile_m=tile_m)


def _reference(x, weight, bias, patch_size):
    # Pure-JAX f32 reference: conv2d stride=kernel=patch_size (NCHW), then
    # flatten(2).transpose(1, 2).
    y = jax.lax.conv_general_dilated(
        x, weight,
        window_strides=(patch_size, patch_size),
        padding="VALID",
        dimension_numbers=("NCHW", "OIHW", "NCHW"),
    )
    y = y + bias.reshape(1, -1, 1, 1)
    B, E, gh, gw = y.shape
    return y.reshape(B, E, gh * gw).transpose(0, 2, 1)


if __name__ == "__main__":
    key = jax.random.PRNGKey(0)
    k_x, k_params = jax.random.split(key)

    B, C, IMG, PATCH, EMB = 2, 4, 16, 4, 32
    x = jax.random.normal(k_x, (B, C, IMG, IMG), dtype=jnp.float32)

    module = PatchEmbedPallas(IMG, PATCH, C, EMB, k_params)

    out = module(x)
    out = jax.block_until_ready(out)

    ref = _reference(x, module.weight, module.bias, PATCH)
    assert out.shape == (B, module.num_patches, EMB), out.shape
    # bf16 inputs with f32 accumulation -> loosened tolerance vs f32 reference.
    assert jnp.allclose(out, ref, atol=5e-2, rtol=5e-2), (
        float(jnp.max(jnp.abs(out - ref))))

    print("KERNEL_OK")
</pallas_src>

<mosaic_0001>
module attributes {stable_mosaic.version = 11 : i64} {
  func.func @_patch_embed_kernel(%arg0: i32, %arg1: memref<32x128xbf16, #tpu.memory_space<vmem>>, %arg2: memref<128x128xbf16, #tpu.memory_space<vmem>>, %arg3: memref<1x128xf32, #tpu.memory_space<vmem>>, %arg4: memref<32x128xf32, #tpu.memory_space<vmem>>) attributes {dimension_semantics = [#tpu.dimension_semantics<parallel>], iteration_bounds = array<i64: 1>, scalar_prefetch = 0 : i64, scratch_operands = 0 : i64, tpu.core_type = #tpu.core_type<tc>, window_params = [{transform_indices = @transform_0, window_bounds = array<i64: 32, 128>}, {pipeline_mode = #tpu.pipeline_mode<synchronous>, transform_indices = @transform_1, window_bounds = array<i64: 128, 128>}, {pipeline_mode = #tpu.pipeline_mode<synchronous>, transform_indices = @transform_2, window_bounds = array<i64: 1, 128>}, {transform_indices = @transform_3, window_bounds = array<i64: 32, 128>}]} {
    %c0 = arith.constant 0 : index
    %c0_0 = arith.constant 0 : index
    %0 = vector.load %arg1[%c0, %c0_0] : memref<32x128xbf16, #tpu.memory_space<vmem>>, vector<32x128xbf16>
    %c0_1 = arith.constant 0 : index
    %c0_2 = arith.constant 0 : index
    %1 = vector.load %arg2[%c0_1, %c0_2] : memref<128x128xbf16, #tpu.memory_space<vmem>>, vector<128x128xbf16>
    %cst = arith.constant dense<0.000000e+00> : vector<32x128xf32>
    %2 = tpu.matmul %0, %1, %cst {dimension_numbers = #tpu.dot_dimension_numbers<[1], [0], [0], [1], [0, 0, 1, 1], [], []>} : vector<32x128xbf16>, vector<128x128xbf16>, vector<32x128xf32> -> vector<32x128xf32>
    %c0_3 = arith.constant 0 : index
    %c0_4 = arith.constant 0 : index
    %3 = vector.load %arg3[%c0_3, %c0_4] : memref<1x128xf32, #tpu.memory_space<vmem>>, vector<1x128xf32>
    %4 = vector.broadcast %3 : vector<1x128xf32> to vector<32x128xf32>
    %5 = arith.addf %2, %4 : vector<32x128xf32>
    %c0_5 = arith.constant 0 : index
    %c0_6 = arith.constant 0 : index
    %6 = vector.load %arg4[%c0_5, %c0_6] : memref<32x128xf32, #tpu.memory_space<vmem>>, vector<32x128xf32>
    tpu.vector_store %arg4[%c0_5, %c0_6], %5 {strides = array<i32>} : memref<32x128xf32, #tpu.memory_space<vmem>>, vector<32x128xf32>,
    return
  }
  func.func @transform_0(%arg0: i32) -> (i32, i32) {
    %c0_i32 = arith.constant 0 : i32
    %c0_i32_0 = arith.constant 0 : i32
    return %arg0, %c0_i32 : i32, i32
  }
  func.func @transform_1(%arg0: i32) -> (i32, i32) {
    %c0_i32 = arith.constant 0 : i32
    %c0_i32_0 = arith.constant 0 : i32
    %c0_i32_1 = arith.constant 0 : i32
    return %c0_i32, %c0_i32_0 : i32, i32
  }
  func.func @transform_2(%arg0: i32) -> (i32, i32) {
    %c0_i32 = arith.constant 0 : i32
    %c0_i32_0 = arith.constant 0 : i32
    %c0_i32_1 = arith.constant 0 : i32
    return %c0_i32, %c0_i32_0 : i32, i32
  }
  func.func @transform_3(%arg0: i32) -> (i32, i32) {
    %c0_i32 = arith.constant 0 : i32
    %c0_i32_0 = arith.constant 0 : i32
    return %arg0, %c0_i32 : i32, i32
  }
}

</mosaic_0001>

<bundles_post_ra>
// kernel: patch_embed_forward.1
= control target key start
LH: loop header
LB: loop body
LE: loop exit
PB: predicated region body
PF: predicated region fallthrough
CT: control target
= control target key end

     0   :  { %s287_s0 = inlined_call_operand.vmem [shape: bf16[32,128], index: 0, kind: input, shape index: {}]   ;;  %s288_s1 = inlined_call_operand.vmem [shape: bf16[128,128], index: 1, kind: input, shape index: {}]   ;;  %s289_s2 = inlined_call_operand.vmem [shape: f32[1,128], index: 2, kind: input, shape index: {}]   ;;  %s290_s3 = inlined_call_operand.hbm [shape: f32[32,128], index: 3, kind: output, shape index: {}]  }
   0x1   :  { %v189_v0 = vld [vmem:[%s288_s1 + $0x38] sm:$0xff]  ;;  %v188_v1 = vld [vmem:[%s288_s1 + $0x30] sm:$0xff] }
   0x2   :  { %99 = vmatpush.bf16.msra.mxu0 %v189_v0  ;;  %190 = vmatpush.bf16.msra.mxu1 %v189_v0 }
   0x3   :  { %8 = vsyncpa [#allocation3], 0  ;;  %v187_v2 = vld [vmem:[%s288_s1 + $0x28] sm:$0xff]  ;;  %v186_v3 = vld [vmem:[%s288_s1 + $0x20] sm:$0xff]  ;;  %s230_s10 = smov 8  }
   0x4   :  { %v185_v4 = vld [vmem:[%s288_s1 + $0x18] sm:$0xff]  ;;  %v184_v5 = vld [vmem:[%s288_s1 + $0x10] sm:$0xff]  ;;  %v183_v6 = vld [vmem:[%s288_s1 + $0x8] sm:$0xff] }
   0x5   :  { %v182_v7 = vld [vmem:[%s288_s1] sm:$0xff]  ;;  %v181_v9 = vld [vmem:[%s287_s0 + $0x8] sm:$0xff]  ;;  %s228_s1 = smov [#allocation2]  }
   0x6   :  { %100 = vmatpush.bf16.msra.mxu0 %v188_v1  ;;  %191 = vmatpush.bf16.msra.mxu1 %v188_v1  ;;  %v180_v8 = vld [vmem:[%s287_s0] sm:$0xff]  ;;  %s126_s7 = sshll.u32 %s228_s1, 4  ;;  %s128_s0 = sshll.u32 %s290_s3, 4  ;;  %s127_s7 = int_to_ptr.vmem [resolvable:$true] %s126_s7  ;;  %s129_s0 = int_to_ptr.hbm [resolvable:$true] %s128_s0 }
   0x7   :  { %v201_v10 = vld [vmem:[%s289_s2] ss:$0 sm:$0xff]  ;;  %s229_s2 = smov 128  }
   0xa   :  { %101 = vmatpush.bf16.msra.mxu0 %v187_v2  ;;  %192 = vmatpush.bf16.msra.mxu1 %v187_v2 }
   0xe   :  { %102 = vmatpush.bf16.msra.mxu0 %v186_v3  ;;  %193 = vmatpush.bf16.msra.mxu1 %v186_v3 }
  0x12   :  { %103 = vmatpush.bf16.msra.mxu0 %v185_v4  ;;  %194 = vmatpush.bf16.msra.mxu1 %v185_v4 }
  0x16   :  { %104 = vmatpush.bf16.msra.mxu0 %v184_v5  ;;  %195 = vmatpush.bf16.msra.mxu1 %v184_v5 }
  0x1a   :  { %105 = vmatpush.bf16.msra.mxu0 %v183_v6  ;;  %196 = vmatpush.bf16.msra.mxu1 %v183_v6 }
  0x1e   :  { %106 = vmatpush.bf16.msra.mxu0 %v182_v7  ;;  %197 = vmatpush.bf16.msra.mxu1 %v182_v7 }
  0x21   :  { %107 = vmatmul.bf16.vlgmr.msra.gmra.mxu0 %v180_v8  ;;  %112 = vmatmul.bf16.vlgmr.msra.gmra.mxu1 %v181_v9 }
  0x9e   :  { %v108_v11 = vpop.f32.mrf.mxu0  ;;  %v113_v12 = vpop.f32.mrf.mxu1 }
  0x9f   :  { %v109_v13 = vadd.f32 %v201_v10, %v108_v11  ;;  %v114_v14 = vadd.f32 %v201_v10, %v113_v12 }
  0xa1   :  { %118 = vst [vmem:[#allocation2] sm:$0xff] %v109_v13 }
  0xa2   :  { %120 = vst [vmem:[#allocation2 + $0x10] sm:$0xff] %v114_v14 }
  0xa6   :  { %v110_v15 = vpop.f32.mrf.mxu0  ;;  %v115_v16 = vpop.f32.mrf.mxu1 }
  0xa7   :  { %v111_v17 = vadd.f32 %v201_v10, %v110_v15  ;;  %v116_v18 = vadd.f32 %v201_v10, %v115_v16 }
  0xa9   :  { %119 = vst [vmem:[#allocation2 + $0x8] sm:$0xff] %v111_v17 }
  0xaa   :  { %121 = vst [vmem:[#allocation2 + $0x18] sm:$0xff] %v116_v18 }
  0xab   :  { %134 = dma.vmem_to_hbm [thread:$0]  %s127_s7, 512, %s129_s0, [#allocation3], %s229_s2, %s229_s2, %s230_s10  }
  0xac   :  { %226 = dma.done.wait [#allocation3], 512  }
  0xad   :  { %227 = vsyncadd [#allocation3], 4294966784 }
  0xae   :  { %139 = vsyncpa [#allocation3], 1 }

</bundles_post_ra>
